<compile_context>
chip_gen: v7x
topology: tpu7x:2x2x1
jax: 0.10.0
libtpu: 0.0.40
codegen_flags: <defaults>
</compile_context>

<pallas_src>
import functools

import jax
import jax.numpy as jnp
from jax.experimental import pallas as pl
from jax.experimental.pallas import tpu as pltpu


def _round_up(x, m):
    return ((x + m - 1) // m) * m


def _cdiv(a, b):
    return (a + b - 1) // b


_QUANTUM = 8 * 128  # one f32 vreg worth of samples


def _dcf_partials_kernel(mult_ref, x_ref, y_ref, o_ref, *,
                         beta, block_rows, tiles_per_core, n_valid,
                         mask_possible):
    # mult_ref: SMEM (1,) f32
    # x_ref:    VMEM (2, R, 128) -- class-major, sublane/lane-dense
    # y_ref:    VMEM (R, 128)
    # o_ref:    VMEM (1, 3, 8, 128) per-core partial-sum accumulator block
    c = pl.program_id(0)          # core index (parallel axis)
    t = pl.program_id(1)          # reduction tile index (arbitrary axis)
    r = block_rows

    @pl.when(t == 0)
    def _():
        o_ref[...] = jnp.zeros_like(o_ref)

    y = y_ref[...].astype(jnp.float32)              # (R, 128)
    ex0 = jnp.exp(x_ref[0].astype(jnp.float32))     # exp(log p(class 0))
    ex1 = jnp.exp(x_ref[1].astype(jnp.float32))     # exp(log p(class 1))

    if beta > 0:
        # 2-class softmax == sigmoid: p1 = 1/(1+exp(s0-s1)), p0 = 1-p1.
        bm = beta * mult_ref[0]
        p1 = pl.reciprocal(1.0 + jnp.exp(bm * (ex0 - ex1)), approx=False)
        ex0 = 1.0 - p1
        ex1 = p1

    def blocksum(v):
        # (R, 128) -> (8, 128): tile-aligned sublane-group add tree (VPU only).
        return jnp.sum(v.reshape(r // 8, 8, 128), axis=0)

    def accumulate(p0, p1v, yv):
        o_ref[0, 0] = o_ref[0, 0] + blocksum(p0 * yv)            # dot(p0, y)
        o_ref[0, 1] = o_ref[0, 1] + blocksum(p1v * (1.0 - yv))   # dot(p1, 1-y)
        o_ref[0, 2] = o_ref[0, 2] + blocksum(yv)                 # sum(y)

    if not mask_possible:
        # Static fast path: every sample of every tile is real.
        accumulate(ex0, ex1, y)
    else:
        base = (c * tiles_per_core + t) * (r * 128)
        need_mask = base + r * 128 > n_valid

        @pl.when(jnp.logical_not(need_mask))
        def _():
            accumulate(ex0, ex1, y)

        @pl.when(need_mask)
        def _():
            idx = (base
                   + jax.lax.broadcasted_iota(jnp.int32, (r, 128), 0) * 128
                   + jax.lax.broadcasted_iota(jnp.int32, (r, 128), 1))
            valid = idx < n_valid
            # jnp.where (select), not multiply: out-of-bounds rows may hold
            # garbage/inf/NaN, which a multiply-mask would propagate.
            accumulate(jnp.where(valid, ex0, 0.0),
                       jnp.where(valid, ex1, 0.0),
                       jnp.where(valid, y, 0.0))


def dcf_loss(x, y, *, alpha, mult, beta=0.0, block_rows=2048, class_major=False):
    """Pallas implementation of DcfLoss.forward.

    x: (N, 2) log class-posteriors (or (2, N) if class_major=True); any float
       dtype -- kept narrow in HBM, cast to f32 in-kernel.
    y: (N,) labels (0/1), any float or int dtype.
    alpha, mult: module parameters (scalars).
    beta: static smax_weight.
    block_rows: rows of 128 samples per grid step (multiple of 8).
      2048 is safe on all generations; v6e can push 4096, v5e 1024-2048.
    """
    if class_major:
        assert x.shape[0] == 2
        xt = x
        n = x.shape[1]
    else:
        n = x.shape[0]
        assert x.shape == (n, 2)
        # TODO(synk): have the producer emit class-major (2, N) activations so
        # this transpose (an extra HBM pass outside the kernel) disappears.
        xt = x.T
    assert n > 0
    y = y.reshape(n)
    if y.dtype == jnp.bool_:
        y = y.astype(jnp.int32)

    # Parameter clamping (done on .data in the PyTorch module).
    alpha = jnp.clip(jnp.asarray(alpha, jnp.float32), 0.05, 0.95)
    mult_arr = jnp.asarray(mult, jnp.float32).reshape((1,))

    # Pad only up to the 1024-sample reshape quantum (zero-fill; masked
    # in-kernel).  Tile overhang beyond that is handled by out-of-bounds
    # boundary blocks + jnp.where masking, not by padding to the tile size.
    n_pad = _round_up(n, _QUANTUM)
    if n_pad != n:
        xt = jnp.pad(xt, ((0, 0), (0, n_pad - n)))
        y = jnp.pad(y, ((0, n_pad - n),))
    n128 = n_pad // 128

    # Free, layout-preserving reshapes to sublane-dense 2-D tiles.
    x3 = xt.reshape(2, n128, 128)
    y2 = y.reshape(n128, 128)

    r = min(_round_up(block_rows, 8), n128)        # rows per tile (multiple of 8)
    tiles_total = _cdiv(n128, r)
    num_cores = 2 if tiles_total >= 2 else 1       # v7x: use both TCs; no-op on 1-TC chips
    tpc = _cdiv(tiles_total, num_cores)            # tiles per core
    mask_possible = (num_cores * tpc * r * 128) != n

    def block_idx(c, t):
        # Clamp so phantom tiles (from an uneven core split) re-read a real
        # block; their contribution is masked to zero in-kernel.
        return jnp.minimum(c * tpc + t, tiles_total - 1)

    kernel = functools.partial(
        _dcf_partials_kernel, beta=float(beta), block_rows=r,
        tiles_per_core=tpc, n_valid=n, mask_possible=mask_possible)

    parts = pl.pallas_call(
        kernel,
        out_shape=jax.ShapeDtypeStruct((num_cores, 3, 8, 128), jnp.float32),
        grid=(num_cores, tpc),
        in_specs=[
            pl.BlockSpec(memory_space=pltpu.MemorySpace.SMEM),               # mult
            pl.BlockSpec((2, r, 128), lambda c, t: (0, block_idx(c, t), 0)),  # x
            pl.BlockSpec((r, 128), lambda c, t: (block_idx(c, t), 0)),        # y
        ],
        out_specs=pl.BlockSpec((1, 3, 8, 128), lambda c, t: (c, 0, 0, 0)),
        compiler_params=pltpu.CompilerParams(
            dimension_semantics=("parallel", "arbitrary"),
            vmem_limit_bytes=32 * 1024 * 1024,
        ),
    )(mult_arr, x3, y2)

    # Cross-core combine + final scalar math in plain JAX (tiny).
    sums = jnp.sum(parts, axis=(0, 2, 3))          # [num_fnr, num_fpr, sum_y]
    num_fnr, num_fpr, sum_y = sums[0], sums[1], sums[2]
    sum_ny = jnp.asarray(n, jnp.float32) - sum_y
    fnr = jnp.where(sum_y > 0.0, num_fnr / sum_y, 0.0)
    fpr = jnp.where(sum_ny > 0.0, num_fpr / sum_ny, 0.0)
    return alpha * fnr + (1.0 - alpha) * fpr


def _dcf_loss_ref(x, y, alpha, mult, beta=0.0):
    """Pure-JAX reference mirroring the PyTorch forward."""
    alpha = jnp.clip(jnp.asarray(alpha, jnp.float32), 0.05, 0.95)
    ex = jnp.exp(x.astype(jnp.float32))
    if beta > 0:
        ex = jax.nn.softmax(beta * mult * ex, axis=-1)
    y = y.astype(jnp.float32)
    sum_y = jnp.sum(y)
    sum_ny = jnp.sum(1.0 - y)
    fnr = jnp.where(sum_y > 0, jnp.dot(ex[:, 0], y) / sum_y, 0.0)
    fpr = jnp.where(sum_ny > 0, jnp.dot(ex[:, 1], 1.0 - y) / sum_ny, 0.0)
    return alpha * fnr + (1.0 - alpha) * fpr


if __name__ == "__main__":
    # Module defaults: alpha (fnr_weight) = 0.75, mult = 1.0, beta = smax_weight.
    fnr_weight = 0.75
    mult = 1.0

    root = jax.random.PRNGKey(0)

    def make_inputs(key, n, x_dtype=jnp.float32, y_dtype=jnp.float32):
        kx, ky = jax.random.split(key)
        logits = jax.random.normal(kx, (n, 2), dtype=jnp.float32)
        x = jax.nn.log_softmax(logits, axis=-1).astype(x_dtype)
        y = jax.random.bernoulli(ky, 0.5, (n,)).astype(y_dtype)
        return x, y

    cases = [
        # (n,    beta, block_rows, x_dtype,      y_dtype)
        (1000, 0.0, 2048, jnp.float32, jnp.float32),   # pad + mask, single tile
        (1000, 0.7, 2048, jnp.float32, jnp.float32),   # beta>0 sigmoid path
        (3000, 0.0, 16,   jnp.float32, jnp.float32),   # partial boundary block, 2-core grid
        (3000, 0.3, 8,    jnp.bfloat16, jnp.int32),    # phantom clamped tile + narrow dtypes
        (2048, 0.5, 8,    jnp.float32, jnp.float32),   # exact cover, unmasked fast path
    ]
    keys = jax.random.split(root, len(cases) + 2)
    for i, (n, beta, br, xd, yd) in enumerate(cases):
        x, y = make_inputs(keys[i], n, xd, yd)
        out = jax.block_until_ready(
            dcf_loss(x, y, alpha=fnr_weight, mult=mult, beta=beta, block_rows=br))
        ref = _dcf_loss_ref(x, y, fnr_weight, mult, beta=beta)
        assert jnp.allclose(out, ref, atol=1e-5, rtol=1e-5), (n, beta, br, out, ref)

    # Class-major input path (producer already emits (2, N)).
    x, y = make_inputs(keys[-2], 1536)
    out = jax.block_until_ready(
        dcf_loss(x.T, y, alpha=fnr_weight, mult=mult, beta=0.0, class_major=True))
    ref = _dcf_loss_ref(x, y, fnr_weight, mult, beta=0.0)
    assert jnp.allclose(out, ref, atol=1e-5, rtol=1e-5), (out, ref)

    # sum(y) == 0 edge case (fnr branch returns 0).
    x, y = make_inputs(keys[-1], 512)
    y = jnp.zeros_like(y)
    out = jax.block_until_ready(dcf_loss(x, y, alpha=fnr_weight, mult=mult, beta=0.0))
    ref = _dcf_loss_ref(x, y, fnr_weight, mult, beta=0.0)
    assert jnp.allclose(out, ref, atol=1e-5, rtol=1e-5), (out, ref)

    print("KERNEL_OK")
</pallas_src>

<mosaic_0001>
module attributes {stable_mosaic.version = 11 : i64} {
  func.func @_dcf_partials_kernel(%arg0: i32, %arg1: i32, %arg2: memref<1xf32, #tpu.memory_space<smem>>, %arg3: memref<2x8x128xf32, #tpu.memory_space<vmem>>, %arg4: memref<8x128xf32, #tpu.memory_space<vmem>>, %arg5: memref<1x3x8x128xf32, #tpu.memory_space<vmem>>) attributes {dimension_semantics = [#tpu.dimension_semantics<parallel>, #tpu.dimension_semantics<arbitrary>], iteration_bounds = array<i64: 1, 1>, scalar_prefetch = 0 : i64, scratch_operands = 0 : i64, tpu.core_type = #tpu.core_type<tc>, window_params = [{transform_indices = @transform_0, window_bounds = array<i64: 1>}, {transform_indices = @transform_1, window_bounds = array<i64: 2, 8, 128>}, {transform_indices = @transform_2, window_bounds = array<i64: 8, 128>}, {transform_indices = @transform_3, window_bounds = array<i64: 1, 3, 8, 128>}]} {
    %c0_i32 = arith.constant 0 : i32
    %0 = arith.cmpi eq, %arg1, %c0_i32 : i32
    %1 = arith.extui %0 : i1 to i32
    %c0_i32_0 = arith.constant 0 : i32
    %2 = arith.cmpi ne, %1, %c0_i32_0 : i32
    scf.if %2 {
      %cst = arith.constant 0.000000e+00 : f32
      %20 = vector.broadcast %cst : f32 to vector<1x3x8x128xf32>
      %c0_10 = arith.constant 0 : index
      %c0_11 = arith.constant 0 : index
      %c0_12 = arith.constant 0 : index
      %c0_13 = arith.constant 0 : index
      %21 = vector.load %arg5[%c0_10, %c0_11, %c0_12, %c0_13] : memref<1x3x8x128xf32, #tpu.memory_space<vmem>>, vector<1x3x8x128xf32>
      tpu.vector_store %arg5[%c0_10, %c0_11, %c0_12, %c0_13], %20 {strides = array<i32>} : memref<1x3x8x128xf32, #tpu.memory_space<vmem>>, vector<1x3x8x128xf32>,
    } else {
    }
    %c0 = arith.constant 0 : index
    %c0_1 = arith.constant 0 : index
    %3 = vector.load %arg4[%c0, %c0_1] : memref<8x128xf32, #tpu.memory_space<vmem>>, vector<8x128xf32>
    %c0_2 = arith.constant 0 : index
    %c0_3 = arith.constant 0 : index
    %c0_4 = arith.constant 0 : index
    %4 = vector.load %arg3[%c0_2, %c0_3, %c0_4] : memref<2x8x128xf32, #tpu.memory_space<vmem>>, vector<1x8x128xf32>
    %5 = vector.shape_cast %4 : vector<1x8x128xf32> to vector<8x128xf32>
    %6 = math.exp %5 : vector<8x128xf32>
    %c1 = arith.constant 1 : index
    %c0_5 = arith.constant 0 : index
    %c0_6 = arith.constant 0 : index
    %7 = vector.load %arg3[%c1, %c0_5, %c0_6] : memref<2x8x128xf32, #tpu.memory_space<vmem>>, vector<1x8x128xf32>
    %8 = vector.shape_cast %7 : vector<1x8x128xf32> to vector<8x128xf32>
    %9 = math.exp %8 : vector<8x128xf32>
    %c1_i32 = arith.constant 1 : i32
    %10 = arith.muli %arg0, %c1_i32 : i32
    %11 = arith.addi %10, %arg1 : i32
    %c1024_i32 = arith.constant 1024 : i32
    %12 = arith.muli %11, %c1024_i32 : i32
    %c1024_i32_7 = arith.constant 1024 : i32
    %13 = arith.addi %12, %c1024_i32_7 : i32
    %c1000_i32 = arith.constant 1000 : i32
    %14 = arith.cmpi sgt, %13, %c1000_i32 : i32
    %true = arith.constant true
    %15 = arith.xori %14, %true : i1
    %16 = arith.extui %15 : i1 to i32
    %c0_i32_8 = arith.constant 0 : i32
    %17 = arith.cmpi ne, %16, %c0_i32_8 : i32
    scf.if %17 {
      %c0_10 = arith.constant 0 : index
      %c0_11 = arith.constant 0 : index
      %c0_12 = arith.constant 0 : index
      %c0_13 = arith.constant 0 : index
      %20 = vector.load %arg5[%c0_10, %c0_11, %c0_12, %c0_13] : memref<1x3x8x128xf32, #tpu.memory_space<vmem>>, vector<1x1x8x128xf32>
      %21 = vector.shape_cast %20 : vector<1x1x8x128xf32> to vector<8x128xf32>
      %22 = arith.mulf %6, %3 : vector<8x128xf32>
      %23 = vector.shape_cast %22 : vector<8x128xf32> to vector<1x8x128xf32>
      %cst = arith.constant dense<0.000000e+00> : vector<8x128xf32>
      %24 = vector.multi_reduction <add>, %23, %cst [0] : vector<1x8x128xf32> to vector<8x128xf32>
      %25 = arith.addf %21, %24 : vector<8x128xf32>
      %c0_14 = arith.constant 0 : index
      %c0_15 = arith.constant 0 : index
      %c0_16 = arith.constant 0 : index
      %c0_17 = arith.constant 0 : index
      %26 = vector.load %arg5[%c0_14, %c0_15, %c0_16, %c0_17] : memref<1x3x8x128xf32, #tpu.memory_space<vmem>>, vector<1x1x8x128xf32>
      %27 = vector.shape_cast %26 : vector<1x1x8x128xf32> to vector<8x128xf32>
      %28 = vector.shape_cast %25 : vector<8x128xf32> to vector<1x1x8x128xf32>
      tpu.vector_store %arg5[%c0_14, %c0_15, %c0_16, %c0_17], %28 {strides = array<i32>} : memref<1x3x8x128xf32, #tpu.memory_space<vmem>>, vector<1x1x8x128xf32>,
      %c0_18 = arith.constant 0 : index
      %c1_19 = arith.constant 1 : index
      %c0_20 = arith.constant 0 : index
      %c0_21 = arith.constant 0 : index
      %29 = vector.load %arg5[%c0_18, %c1_19, %c0_20, %c0_21] : memref<1x3x8x128xf32, #tpu.memory_space<vmem>>, vector<1x1x8x128xf32>
      %30 = vector.shape_cast %29 : vector<1x1x8x128xf32> to vector<8x128xf32>
      %cst_22 = arith.constant 1.000000e+00 : f32
      %31 = vector.broadcast %cst_22 : f32 to vector<8x128xf32>
      %32 = arith.subf %31, %3 : vector<8x128xf32>
      %33 = arith.mulf %9, %32 : vector<8x128xf32>
      %34 = vector.shape_cast %33 : vector<8x128xf32> to vector<1x8x128xf32>
      %cst_23 = arith.constant dense<0.000000e+00> : vector<8x128xf32>
      %35 = vector.multi_reduction <add>, %34, %cst_23 [0] : vector<1x8x128xf32> to vector<8x128xf32>
      %36 = arith.addf %30, %35 : vector<8x128xf32>
      %c0_24 = arith.constant 0 : index
      %c1_25 = arith.constant 1 : index
      %c0_26 = arith.constant 0 : index
      %c0_27 = arith.constant 0 : index
      %37 = vector.load %arg5[%c0_24, %c1_25, %c0_26, %c0_27] : memref<1x3x8x128xf32, #tpu.memory_space<vmem>>, vector<1x1x8x128xf32>
      %38 = vector.shape_cast %37 : vector<1x1x8x128xf32> to vector<8x128xf32>
      %39 = vector.shape_cast %36 : vector<8x128xf32> to vector<1x1x8x128xf32>
      tpu.vector_store %arg5[%c0_24, %c1_25, %c0_26, %c0_27], %39 {strides = array<i32>} : memref<1x3x8x128xf32, #tpu.memory_space<vmem>>, vector<1x1x8x128xf32>,
      %c0_28 = arith.constant 0 : index
      %c2 = arith.constant 2 : index
      %c0_29 = arith.constant 0 : index
      %c0_30 = arith.constant 0 : index
      %40 = vector.load %arg5[%c0_28, %c2, %c0_29, %c0_30] : memref<1x3x8x128xf32, #tpu.memory_space<vmem>>, vector<1x1x8x128xf32>
      %41 = vector.shape_cast %40 : vector<1x1x8x128xf32> to vector<8x128xf32>
      %42 = vector.shape_cast %3 : vector<8x128xf32> to vector<1x8x128xf32>
      %cst_31 = arith.constant dense<0.000000e+00> : vector<8x128xf32>
      %43 = vector.multi_reduction <add>, %42, %cst_31 [0] : vector<1x8x128xf32> to vector<8x128xf32>
      %44 = arith.addf %41, %43 : vector<8x128xf32>
      %c0_32 = arith.constant 0 : index
      %c2_33 = arith.constant 2 : index
      %c0_34 = arith.constant 0 : index
      %c0_35 = arith.constant 0 : index
      %45 = vector.load %arg5[%c0_32, %c2_33, %c0_34, %c0_35] : memref<1x3x8x128xf32, #tpu.memory_space<vmem>>, vector<1x1x8x128xf32>
      %46 = vector.shape_cast %45 : vector<1x1x8x128xf32> to vector<8x128xf32>
      %47 = vector.shape_cast %44 : vector<8x128xf32> to vector<1x1x8x128xf32>
      tpu.vector_store %arg5[%c0_32, %c2_33, %c0_34, %c0_35], %47 {strides = array<i32>} : memref<1x3x8x128xf32, #tpu.memory_space<vmem>>, vector<1x1x8x128xf32>,
    } else {
    }
    %18 = arith.extui %14 : i1 to i32
    %c0_i32_9 = arith.constant 0 : i32
    %19 = arith.cmpi ne, %18, %c0_i32_9 : i32
    scf.if %19 {
      %20 = tpu.iota {dimensions = array<i32: 0>} : vector<8x128xi32>
      %c128_i32 = arith.constant 128 : i32
      %21 = vector.broadcast %c128_i32 : i32 to vector<8x128xi32>
      %22 = arith.muli %20, %21 : vector<8x128xi32>
      %23 = vector.broadcast %12 : i32 to vector<8x128xi32>
      %24 = arith.addi %23, %22 : vector<8x128xi32>
      %25 = tpu.iota {dimensions = array<i32: 1>} : vector<8x128xi32>
      %26 = arith.addi %24, %25 : vector<8x128xi32>
      %c1000_i32_10 = arith.constant 1000 : i32
      %27 = vector.broadcast %c1000_i32_10 : i32 to vector<8x128xi32>
      %28 = arith.cmpi slt, %26, %27 : vector<8x128xi32>
      %cst = arith.constant 0.000000e+00 : f32
      %29 = vector.broadcast %cst : f32 to vector<8x128xf32>
      %30 = arith.select %28, %6, %29 : vector<8x128xi1>, vector<8x128xf32>
      %cst_11 = arith.constant 0.000000e+00 : f32
      %31 = vector.broadcast %cst_11 : f32 to vector<8x128xf32>
      %32 = arith.select %28, %9, %31 : vector<8x128xi1>, vector<8x128xf32>
      %cst_12 = arith.constant 0.000000e+00 : f32
      %33 = vector.broadcast %cst_12 : f32 to vector<8x128xf32>
      %34 = arith.select %28, %3, %33 : vector<8x128xi1>, vector<8x128xf32>
      %c0_13 = arith.constant 0 : index
      %c0_14 = arith.constant 0 : index
      %c0_15 = arith.constant 0 : index
      %c0_16 = arith.constant 0 : index
      %35 = vector.load %arg5[%c0_13, %c0_14, %c0_15, %c0_16] : memref<1x3x8x128xf32, #tpu.memory_space<vmem>>, vector<1x1x8x128xf32>
      %36 = vector.shape_cast %35 : vector<1x1x8x128xf32> to vector<8x128xf32>
      %37 = arith.mulf %30, %34 : vector<8x128xf32>
      %38 = vector.shape_cast %37 : vector<8x128xf32> to vector<1x8x128xf32>
      %cst_17 = arith.constant dense<0.000000e+00> : vector<8x128xf32>
      %39 = vector.multi_reduction <add>, %38, %cst_17 [0] : vector<1x8x128xf32> to vector<8x128xf32>
      %40 = arith.addf %36, %39 : vector<8x128xf32>
      %c0_18 = arith.constant 0 : index
      %c0_19 = arith.constant 0 : index
      %c0_20 = arith.constant 0 : index
      %c0_21 = arith.constant 0 : index
      %41 = vector.load %arg5[%c0_18, %c0_19, %c0_20, %c0_21] : memref<1x3x8x128xf32, #tpu.memory_space<vmem>>, vector<1x1x8x128xf32>
      %42 = vector.shape_cast %41 : vector<1x1x8x128xf32> to vector<8x128xf32>
      %43 = vector.shape_cast %40 : vector<8x128xf32> to vector<1x1x8x128xf32>
      tpu.vector_store %arg5[%c0_18, %c0_19, %c0_20, %c0_21], %43 {strides = array<i32>} : memref<1x3x8x128xf32, #tpu.memory_space<vmem>>, vector<1x1x8x128xf32>,
      %c0_22 = arith.constant 0 : index
      %c1_23 = arith.constant 1 : index
      %c0_24 = arith.constant 0 : index
      %c0_25 = arith.constant 0 : index
      %44 = vector.load %arg5[%c0_22, %c1_23, %c0_24, %c0_25] : memref<1x3x8x128xf32, #tpu.memory_space<vmem>>, vector<1x1x8x128xf32>
      %45 = vector.shape_cast %44 : vector<1x1x8x128xf32> to vector<8x128xf32>
      %cst_26 = arith.constant 1.000000e+00 : f32
      %46 = vector.broadcast %cst_26 : f32 to vector<8x128xf32>
      %47 = arith.subf %46, %34 : vector<8x128xf32>
      %48 = arith.mulf %32, %47 : vector<8x128xf32>
      %49 = vector.shape_cast %48 : vector<8x128xf32> to vector<1x8x128xf32>
      %cst_27 = arith.constant dense<0.000000e+00> : vector<8x128xf32>
      %50 = vector.multi_reduction <add>, %49, %cst_27 [0] : vector<1x8x128xf32> to vector<8x128xf32>
      %51 = arith.addf %45, %50 : vector<8x128xf32>
      %c0_28 = arith.constant 0 : index
      %c1_29 = arith.constant 1 : index
      %c0_30 = arith.constant 0 : index
      %c0_31 = arith.constant 0 : index
      %52 = vector.load %arg5[%c0_28, %c1_29, %c0_30, %c0_31] : memref<1x3x8x128xf32, #tpu.memory_space<vmem>>, vector<1x1x8x128xf32>
      %53 = vector.shape_cast %52 : vector<1x1x8x128xf32> to vector<8x128xf32>
      %54 = vector.shape_cast %51 : vector<8x128xf32> to vector<1x1x8x128xf32>
      tpu.vector_store %arg5[%c0_28, %c1_29, %c0_30, %c0_31], %54 {strides = array<i32>} : memref<1x3x8x128xf32, #tpu.memory_space<vmem>>, vector<1x1x8x128xf32>,
      %c0_32 = arith.constant 0 : index
      %c2 = arith.constant 2 : index
      %c0_33 = arith.constant 0 : index
      %c0_34 = arith.constant 0 : index
      %55 = vector.load %arg5[%c0_32, %c2, %c0_33, %c0_34] : memref<1x3x8x128xf32, #tpu.memory_space<vmem>>, vector<1x1x8x128xf32>
      %56 = vector.shape_cast %55 : vector<1x1x8x128xf32> to vector<8x128xf32>
      %57 = vector.shape_cast %34 : vector<8x128xf32> to vector<1x8x128xf32>
      %cst_35 = arith.constant dense<0.000000e+00> : vector<8x128xf32>
      %58 = vector.multi_reduction <add>, %57, %cst_35 [0] : vector<1x8x128xf32> to vector<8x128xf32>
      %59 = arith.addf %56, %58 : vector<8x128xf32>
      %c0_36 = arith.constant 0 : index
      %c2_37 = arith.constant 2 : index
      %c0_38 = arith.constant 0 : index
      %c0_39 = arith.constant 0 : index
      %60 = vector.load %arg5[%c0_36, %c2_37, %c0_38, %c0_39] : memref<1x3x8x128xf32, #tpu.memory_space<vmem>>, vector<1x1x8x128xf32>
      %61 = vector.shape_cast %60 : vector<1x1x8x128xf32> to vector<8x128xf32>
      %62 = vector.shape_cast %59 : vector<8x128xf32> to vector<1x1x8x128xf32>
      tpu.vector_store %arg5[%c0_36, %c2_37, %c0_38, %c0_39], %62 {strides = array<i32>} : memref<1x3x8x128xf32, #tpu.memory_space<vmem>>, vector<1x1x8x128xf32>,
    } else {
    }
    return
  }
  func.func @transform_0(%arg0: i32, %arg1: i32) -> i32 {
    %c0_i32 = arith.constant 0 : i32
    %c0_i32_0 = arith.constant 0 : i32
    return %c0_i32 : i32
  }
  func.func @transform_1(%arg0: i32, %arg1: i32) -> (i32, i32, i32) {
    %c1_i32 = arith.constant 1 : i32
    %0 = arith.muli %arg0, %c1_i32 : i32
    %1 = arith.addi %0, %arg1 : i32
    %c0_i32 = arith.constant 0 : i32
    %2 = arith.minsi %1, %c0_i32 : i32
    %c0_i32_0 = arith.constant 0 : i32
    %c0_i32_1 = arith.constant 0 : i32
    %c0_i32_2 = arith.constant 0 : i32
    return %c0_i32_0, %2, %c0_i32_1 : i32, i32, i32
  }
  func.func @transform_2(%arg0: i32, %arg1: i32) -> (i32, i32) {
    %c1_i32 = arith.constant 1 : i32
    %0 = arith.muli %arg0, %c1_i32 : i32
    %1 = arith.addi %0, %arg1 : i32
    %c0_i32 = arith.constant 0 : i32
    %2 = arith.minsi %1, %c0_i32 : i32
    %c0_i32_0 = arith.constant 0 : i32
    %c0_i32_1 = arith.constant 0 : i32
    return %2, %c0_i32_0 : i32, i32
  }
  func.func @transform_3(%arg0: i32, %arg1: i32) -> (i32, i32, i32, i32) {
    %c0_i32 = arith.constant 0 : i32
    %c0_i32_0 = arith.constant 0 : i32
    %c0_i32_1 = arith.constant 0 : i32
    %c0_i32_2 = arith.constant 0 : i32
    return %arg0, %c0_i32, %c0_i32_0, %c0_i32_1 : i32, i32, i32, i32
  }
}

</mosaic_0001>

<bundles_post_ra>
// kernel: tpu_custom_call.1
= control target key start
LH: loop header
LB: loop body
LE: loop exit
PB: predicated region body
PF: predicated region fallthrough
CT: control target
= control target key end

     0   :  { %9 = vsyncpa [#allocation4], 0  ;;  %s301_s0 = inlined_call_operand.<no memory space> [shape: f32[1], index: 0, kind: input, shape index: {}]   ;;  %s302_s1 = inlined_call_operand.hbm [shape: f32[2,8,128], index: 1, kind: input, shape index: {}]   ;;  %s303_s2 = inlined_call_operand.hbm [shape: f32[8,128], index: 2, kind: input, shape index: {}]   ;;  %s304_s3 = inlined_call_operand.hbm [shape: f32[1,3,8,128], index: 3, kind: output, shape index: {}]  }
   0x1   :  { %10 = vsyncpa [#allocation7], 0 }
   0x2   :  { %11 = vsyncpa [#allocation5], 0  ;;  %s234_s12 = smov [#allocation3]   ;;  %s162_s16 = scalar_lea.hbm %s302_s1, 256 }
   0x3   :  { %s24_s13 = sshll.u32 %s234_s12, 4  ;;  %p163_p0 = scmp.ne.s32.totalorder %s302_s1, %s162_s16  ;;  %s25_s13 = int_to_ptr.vmem [resolvable:$true] %s24_s13 }
   0x4   :  { %p166_p1 = scmp.lt.u32.totalorder %s162_s16, %s302_s1 }
   0x6   :  { %p168_p2 = pnand %p166_p1, %p163_p0 }
   0x8   :  { %171 = shalt.err (!%p168_p2)
}
   0x9   :  { %s172_s20 = scalar_lea.vmem %s25_s13, 256  ;;  %p177_p4 = scmp.lt.s32.totalorder %s25_s13, %s25_s13 }
   0xa   :  { %p173_p3 = scmp.ne.s32.totalorder %s25_s13, %s172_s20  ;;  %p178_p5 = scmp.lt.s32.totalorder %s172_s20, %s172_s20 }
   0xc   :  { %p179_p6 = por %p178_p5, %p177_p4 }
   0xe   :  { %p180_p7 = pnand %p179_p6, %p173_p3 }
  0x10   :  { %183 = shalt.err (!%p180_p7)
}
  0x11   :  { %s235_s21 = smov 128   ;;  %s236_s22 = smov 8  }
  0x12   :  { %30 = dma.hbm_to_vmem [thread:$0]  %s302_s1, 256, %s25_s13, [#allocation4], %s235_s21, %s235_s21, %s236_s22  }
  0x13   :  { %s237_s25 = smov [#allocation6]   ;;  %s184_s29 = scalar_lea.hbm %s303_s2, 128 }
  0x14   :  { %s42_s26 = sshll.u32 %s237_s25, 4  ;;  %p185_p8 = scmp.ne.s32.totalorder %s303_s2, %s184_s29  ;;  %s43_s26 = int_to_ptr.vmem [resolvable:$true] %s42_s26 }
  0x15   :  { %p188_p9 = scmp.lt.u32.totalorder %s184_s29, %s303_s2 }
  0x17   :  { %p190_p10 = pnand %p188_p9, %p185_p8 }
  0x19   :  { %193 = shalt.err (!%p190_p10)
}
  0x1a   :  { %s194_s7 = scalar_lea.vmem %s43_s26, 128  ;;  %p199_p12 = scmp.lt.s32.totalorder %s43_s26, %s43_s26 }
  0x1b   :  { %p195_p11 = scmp.ne.s32.totalorder %s43_s26, %s194_s7  ;;  %p200_p13 = scmp.lt.s32.totalorder %s194_s7, %s194_s7 }
  0x1d   :  { %p201_p0 = por %p200_p13, %p199_p12 }
  0x1f   :  { %p202_p1 = pnand %p201_p0, %p195_p11 }
  0x21   :  { %205 = shalt.err (!%p202_p1)
}
  0x22   :  { %45 = dma.hbm_to_vmem [thread:$0]  %s303_s2, 128, %s43_s26, [#allocation7]  }
  0x23   :  { %228 = dma.done.wait [#allocation4], 256  }
  0x24   :  { %229 = vsyncadd [#allocation4], 4294967040 }
  0x25   :  { %230 = dma.done.wait [#allocation7], 128  }
  0x26   :  { %231 = vsyncadd [#allocation7], 4294967168  ;;  %v101_v0 = vlaneseq  ;;  %v65_v5 = vld [vmem:[#allocation6] sm:$0xff]  ;;  %v66_v6 = vld [vmem:[#allocation3] sm:$0xff]  ;;  %s238_s2 = smov [#allocation8]  }
  0x27   :  { %v70_v7 = vld [vmem:[#allocation3 + $0x8] sm:$0xff]  ;;  %v67_v8 = vmul.f32 1.442695, %v66_v6  ;;  %s135_s9 = sshll.u32 %s238_s2, 4  ;;  %s136_s9 = int_to_ptr.vmem [resolvable:$true] %s135_s9 }
  0x28   :  { %v102_v1 = vshrl.u32 %v101_v0, 7  ;;  %v107_v2 = vand.u32 127, %v101_v0  ;;  %v71_v9 = vmul.f32 1.442695, %v70_v7  ;;  %s206_s10 = scalar_lea.vmem %s136_s9, 384  ;;  %p211_p3 = scmp.lt.s32.totalorder %s136_s9, %s136_s9 }
  0x29   :  { %158 = vpow2.f32 %v67_v8  ;;  %p207_p2 = scmp.ne.s32.totalorder %s136_s9, %s206_s10  ;;  %p212_p4 = scmp.lt.s32.totalorder %s206_s10, %s206_s10 }
  0x2a   :  { %v103_v3 = vmul.u32 128, %v102_v1  ;;  %160 = vpow2.f32 %v71_v9 }
  0x2b   :  { %p213_p5 = por %p212_p4, %p211_p3 }
  0x2c   :  { %v108_v4 = vadd.s32 %v107_v2, %v103_v3 }
  0x2d   :  { %p214_p6 = pnand %p213_p5, %p207_p2 }
  0x2e   :  { %vm109_vm0 = vcmp.lt.s32.totalorder %v108_v4, 1000 }
  0x2f   :  { %v112_v10 = vsel %vm109_vm0, %v65_v5, 0.0 }
  0x30   :  { %129 = vst [vmem:[#allocation8 + $0x10] sm:$0xff] %v112_v10  ;;  %v120_v11 = vsub.f32 1.0, %v112_v10 }
  0x33   :  { %v159_v12 = vpop.eup %158 }
  0x34   :  { %v161_v13 = vpop.eup %160  ;;  %v110_v14 = vsel %vm109_vm0, %v159_v12, 0.0 }
  0x35   :  { %v114_v15 = vmul.f32 %v112_v10, %v110_v14  ;;  %v111_v16 = vsel %vm109_vm0, %v161_v13, 0.0 }
  0x36   :  { %v121_v17 = vmul.f32 %v120_v11, %v111_v16 }
  0x37   :  { %117 = vst [vmem:[#allocation8] sm:$0xff] %v114_v15 }
  0x38   :  { %124 = vst [vmem:[#allocation8 + $0x8] sm:$0xff] %v121_v17 }
  0x39   :  { %217 = shalt.err (!%p214_p6)
}
  0x3a   :  { %s218_s13 = scalar_lea.hbm %s304_s3, 384 }
  0x3b   :  { %p219_p7 = scmp.ne.s32.totalorder %s304_s3, %s218_s13  ;;  %p222_p8 = scmp.lt.u32.totalorder %s218_s13, %s304_s3 }
  0x3d   :  { %p224_p9 = pnand %p222_p8, %p219_p7 }
  0x3f   :  { %227 = shalt.err (!%p224_p9)
}
  0x40   :  { %141 = dma.vmem_to_hbm [thread:$0]  %s136_s9, 384, %s304_s3, [#allocation5], %s235_s21, %s235_s21, %s236_s22  }
  0x41   :  { %232 = dma.done.wait [#allocation5], 384  }
  0x42   :  { %233 = vsyncadd [#allocation5], 4294966912 }
  0x43   :  { %145 = vsyncpa [#allocation4], 1 }
  0x44   :  { %146 = vsyncpa [#allocation7], 1 }
  0x45   :  { %147 = vsyncpa [#allocation5], 1 }

</bundles_post_ra>
